<compile_context>
chip_gen: v7x
topology: tpu7x:2x2x1
jax: 0.10.0
libtpu: 0.0.40
codegen_flags: <defaults>
</compile_context>

<pallas_src>
import functools
import math

import jax
import jax.numpy as jnp
from jax.experimental import pallas as pl
from jax.experimental.pallas import tpu as pltpu

BACKBONE_EPS = 1e-12   # HuggingFace BERT backbone LayerNorm eps
LOGITS_EPS = 1e-5      # torch.nn.LayerNorm default (LogitsLayer)
LPAD = 128             # lane-dense padding of the num_labels axis

# Tile targets.
TM, TN, TK = 512, 512, 512       # matmul tiles
TQ, TKV = 512, 512               # attention query / key-value tiles

VMEM_LIMIT = 32 * 1024 * 1024    # explicit scoped-VMEM limit (safe on v5e/v6e/v7x)


def _compiler_params(sem):
    return pltpu.CompilerParams(dimension_semantics=sem,
                                vmem_limit_bytes=VMEM_LIMIT)


def _tile(dim, target, align):
    """Largest multiple of `align` <= target that divides dim; else full dim."""
    if dim <= target:
        return dim
    t = (target // align) * align
    while t >= align:
        if dim % t == 0:
            return t
        t -= align
    return dim


# ----------------------------- LayerNorm (embeddings) -----------------------------

def _ln_kernel(x_ref, g_ref, b_ref, o_ref, *, eps):
    h = x_ref[...].astype(jnp.float32)
    mu = jnp.mean(h, axis=-1, keepdims=True)
    var = jnp.mean((h - mu) ** 2, axis=-1, keepdims=True)
    y = (h - mu) * jax.lax.rsqrt(var + eps) * g_ref[...] + b_ref[...]
    o_ref[...] = y.astype(o_ref.dtype)


def layernorm(x, gamma, beta, eps=BACKBONE_EPS):
    M, N = x.shape
    tm = _tile(M, TM, 8)
    return pl.pallas_call(
        functools.partial(_ln_kernel, eps=eps),
        out_shape=jax.ShapeDtypeStruct((M, N), jnp.bfloat16),
        grid=(M // tm,),
        in_specs=[pl.BlockSpec((tm, N), lambda i: (i, 0)),
                  pl.BlockSpec((1, N), lambda i: (0, 0)),
                  pl.BlockSpec((1, N), lambda i: (0, 0))],
        out_specs=pl.BlockSpec((tm, N), lambda i: (i, 0)),
        compiler_params=_compiler_params(("parallel",)),
    )(x, gamma.reshape(1, N), beta.reshape(1, N))


# ----------------------------- tiled Linear (+ optional GELU) -----------------------------

def _linear_kernel(x_ref, w_ref, b_ref, o_ref, acc_ref, *, gelu):
    @pl.when(pl.program_id(2) == 0)
    def _():
        acc_ref[...] = jnp.zeros_like(acc_ref)

    acc_ref[...] += jnp.dot(x_ref[...], w_ref[...],
                            preferred_element_type=jnp.float32)

    @pl.when(pl.program_id(2) == pl.num_programs(2) - 1)
    def _():
        y = acc_ref[...] + b_ref[...]
        if gelu:
            y = jax.nn.gelu(y, approximate=False)   # PyTorch nn.GELU default (erf)
        o_ref[...] = y.astype(o_ref.dtype)


def linear(x, w, b, gelu=False):
    M, K = x.shape
    N = w.shape[1]
    tm, tn, tk = _tile(M, TM, 8), _tile(N, TN, 128), _tile(K, TK, 128)
    return pl.pallas_call(
        functools.partial(_linear_kernel, gelu=gelu),
        out_shape=jax.ShapeDtypeStruct((M, N), jnp.bfloat16),
        grid=(M // tm, N // tn, K // tk),
        in_specs=[pl.BlockSpec((tm, tk), lambda i, j, k: (i, k)),
                  pl.BlockSpec((tk, tn), lambda i, j, k: (k, j)),
                  pl.BlockSpec((1, tn), lambda i, j, k: (0, j))],
        out_specs=pl.BlockSpec((tm, tn), lambda i, j, k: (i, j)),
        scratch_shapes=[pltpu.VMEM((tm, tn), jnp.float32)],
        compiler_params=_compiler_params(("parallel", "parallel", "arbitrary")),
    )(x, w, b.reshape(1, N))


# -------------------- QKV projection emitting a [3, B*S, H] layout --------------------

def _qkv_kernel(x_ref, w_ref, b_ref, o_ref, acc_ref):
    @pl.when(pl.program_id(2) == 0)
    def _():
        acc_ref[...] = jnp.zeros_like(acc_ref)

    acc_ref[...] += jnp.dot(x_ref[...], w_ref[0],
                            preferred_element_type=jnp.float32)

    @pl.when(pl.program_id(2) == pl.num_programs(2) - 1)
    def _():
        o_ref[0] = (acc_ref[...] + b_ref[0]).astype(o_ref.dtype)


def qkv_linear(x, w, b):
    """x: [M, K] bf16; w: [3, K, H] bf16; b: [3, 1, H] f32 -> [3, M, H] bf16."""
    M, K = x.shape
    _, _, H = w.shape
    tm, tk = _tile(M, TM, 8), _tile(K, TK, 128)
    tn = _tile(H, TN, 128)
    nH = H // tn
    return pl.pallas_call(
        _qkv_kernel,
        out_shape=jax.ShapeDtypeStruct((3, M, H), jnp.bfloat16),
        grid=(M // tm, 3 * nH, K // tk),
        in_specs=[pl.BlockSpec((tm, tk), lambda i, j, k: (i, k)),
                  pl.BlockSpec((1, tk, tn), lambda i, j, k: (j // nH, k, j % nH)),
                  pl.BlockSpec((1, 1, tn), lambda i, j, k: (j // nH, 0, j % nH))],
        out_specs=pl.BlockSpec((1, tm, tn),
                               lambda i, j, k: (j // nH, i, j % nH)),
        scratch_shapes=[pltpu.VMEM((tm, tn), jnp.float32)],
        compiler_params=_compiler_params(("parallel", "parallel", "arbitrary")),
    )(x, w, b)


# ----------------------------- fused Linear + residual + LayerNorm -----------------------------

def _linear_add_ln_kernel(x_ref, w_ref, b_ref, r_ref, g_ref, beta_ref,
                          o_ref, acc_ref, *, eps):
    @pl.when(pl.program_id(1) == 0)
    def _():
        acc_ref[...] = jnp.zeros_like(acc_ref)

    acc_ref[...] += jnp.dot(x_ref[...], w_ref[...],
                            preferred_element_type=jnp.float32)

    @pl.when(pl.program_id(1) == pl.num_programs(1) - 1)
    def _():
        h = acc_ref[...] + b_ref[...] + r_ref[...].astype(jnp.float32)
        mu = jnp.mean(h, axis=-1, keepdims=True)
        var = jnp.mean((h - mu) ** 2, axis=-1, keepdims=True)
        y = (h - mu) * jax.lax.rsqrt(var + eps) * g_ref[...] + beta_ref[...]
        o_ref[...] = y.astype(o_ref.dtype)


def linear_add_ln(x, w, b, residual, gamma, beta, eps=BACKBONE_EPS):
    M, K = x.shape
    N = w.shape[1]
    tm, tk = _tile(M, TM, 8), _tile(K, TK, 128)
    return pl.pallas_call(
        functools.partial(_linear_add_ln_kernel, eps=eps),
        out_shape=jax.ShapeDtypeStruct((M, N), jnp.bfloat16),
        grid=(M // tm, K // tk),
        in_specs=[pl.BlockSpec((tm, tk), lambda i, k: (i, k)),
                  pl.BlockSpec((tk, N), lambda i, k: (k, 0)),
                  pl.BlockSpec((1, N), lambda i, k: (0, 0)),
                  pl.BlockSpec((tm, N), lambda i, k: (i, 0)),
                  pl.BlockSpec((1, N), lambda i, k: (0, 0)),
                  pl.BlockSpec((1, N), lambda i, k: (0, 0))],
        out_specs=pl.BlockSpec((tm, N), lambda i, k: (i, 0)),
        scratch_shapes=[pltpu.VMEM((tm, N), jnp.float32)],
        compiler_params=_compiler_params(("parallel", "arbitrary")),
    )(x, w, b.reshape(1, N), residual, gamma.reshape(1, N), beta.reshape(1, N))


# ------------------- multi-head self-attention (flash-style, online softmax) -------------------

def _attn_kernel(q_ref, k_ref, v_ref, bias_ref, o_ref,
                 m_scr, l_scr, acc_scr, *, scale, hpb, dh):
    kvi = pl.program_id(3)

    @pl.when(kvi == 0)
    def _():
        m_scr[...] = jnp.full_like(m_scr, -jnp.inf)
        l_scr[...] = jnp.zeros_like(l_scr)
        acc_scr[...] = jnp.zeros_like(acc_scr)

    bias = bias_ref[0]                                   # [1, tkv] additive key mask
    for h in range(hpb):                                 # static, unrolled head loop
        sl = slice(h * dh, (h + 1) * dh)
        q = q_ref[0, :, sl]                              # [tq,  dh] bf16
        k = k_ref[0, :, sl]                              # [tkv, dh] bf16
        v = v_ref[0, :, sl]
        # contract on the Dh axis of both operands -> no k.T relayout
        s = jax.lax.dot_general(q, k, (((1,), (1,)), ((), ())),
                                preferred_element_type=jnp.float32)
        s = s * scale + bias
        m_prev = m_scr[h]                                # [tq, 1]
        m_new = jnp.maximum(m_prev, jnp.max(s, axis=-1, keepdims=True))
        alpha = jnp.exp(m_prev - m_new)
        p = jnp.exp(s - m_new)
        l_scr[h] = alpha * l_scr[h] + jnp.sum(p, axis=-1, keepdims=True)
        acc_scr[h] = alpha * acc_scr[h] + jnp.dot(
            p.astype(jnp.bfloat16), v, preferred_element_type=jnp.float32)
        m_scr[h] = m_new

    @pl.when(kvi == pl.num_programs(3) - 1)
    def _():
        outs = [acc_scr[h] * pl.reciprocal(l_scr[h], approx=True)
                for h in range(hpb)]
        # single lane-dense full-block store (per-head results concatenated)
        o_ref[...] = jnp.concatenate(outs, axis=-1).astype(o_ref.dtype)


def attention(qkv, bias, B, S, num_heads, head_dim):
    """qkv: [3, B*S, H] bf16; bias: [B, 1, S] f32 -> [B*S, H] bf16."""
    _, M, H = qkv.shape
    # Pack heads so the lane block is 128-aligned (or the full hidden dim).
    hpb = num_heads
    for g in range(1, num_heads):
        if num_heads % g == 0 and (g * head_dim) % 128 == 0:
            hpb = g
            break
    hb = hpb * head_dim
    nhb = H // hb
    tq = _tile(S, TQ, 8)
    tkv = _tile(S, TKV, 128)
    nq, nkv = S // tq, S // tkv

    q_map = lambda b, j, qi, kvi: (0, b * nq + qi, j)
    k_map = lambda b, j, qi, kvi: (1, b * nkv + kvi, j)
    v_map = lambda b, j, qi, kvi: (2, b * nkv + kvi, j)

    return pl.pallas_call(
        functools.partial(_attn_kernel, scale=1.0 / math.sqrt(head_dim),
                          hpb=hpb, dh=head_dim),
        out_shape=jax.ShapeDtypeStruct((M, H), jnp.bfloat16),
        grid=(B, nhb, nq, nkv),
        in_specs=[pl.BlockSpec((1, tq, hb), q_map),
                  pl.BlockSpec((1, tkv, hb), k_map),
                  pl.BlockSpec((1, tkv, hb), v_map),
                  pl.BlockSpec((1, 1, tkv), lambda b, j, qi, kvi: (b, 0, kvi))],
        out_specs=pl.BlockSpec((tq, hb), lambda b, j, qi, kvi: (b * nq + qi, j)),
        scratch_shapes=[pltpu.VMEM((hpb, tq, 1), jnp.float32),
                        pltpu.VMEM((hpb, tq, 1), jnp.float32),
                        pltpu.VMEM((hpb, tq, head_dim), jnp.float32)],
        compiler_params=_compiler_params(
            ("parallel", "parallel", "parallel", "arbitrary")),
    )(qkv, qkv, qkv, bias)


# ----------------- fused FF2 + residual + LN2 + LogitsLayer (Linear->LN->GELU) -----------------

def _ff2_ln_logits_kernel(x_ref, w2_ref, b2_ref, r_ref, g2_ref, beta2_ref,
                          wl_ref, bl_ref, gl_ref, betal_ref, o_ref, acc_ref,
                          *, num_labels):
    @pl.when(pl.program_id(1) == 0)
    def _():
        acc_ref[...] = jnp.zeros_like(acc_ref)

    acc_ref[...] += jnp.dot(x_ref[...], w2_ref[...],
                            preferred_element_type=jnp.float32)

    @pl.when(pl.program_id(1) == pl.num_programs(1) - 1)
    def _():
        # residual + backbone LayerNorm -> last_hidden_state (kept in VMEM only)
        h = acc_ref[...] + b2_ref[...] + r_ref[...].astype(jnp.float32)
        mu = jnp.mean(h, axis=-1, keepdims=True)
        var = jnp.mean((h - mu) ** 2, axis=-1, keepdims=True)
        xh = (h - mu) * jax.lax.rsqrt(var + BACKBONE_EPS) * g2_ref[...] + beta2_ref[...]
        # LogitsLayer: (Dropout=id) -> Linear -> LayerNorm(num_labels) -> GELU,
        # on a lane-dense 128-wide padded label axis (masked LN statistics).
        y = jnp.dot(xh.astype(jnp.bfloat16), wl_ref[...],
                    preferred_element_type=jnp.float32) + bl_ref[...]
        lane = jax.lax.broadcasted_iota(jnp.int32, y.shape, 1)
        mask = lane < num_labels
        inv_n = 1.0 / num_labels
        mu_l = jnp.sum(jnp.where(mask, y, 0.0), axis=-1, keepdims=True) * inv_n
        d = jnp.where(mask, y - mu_l, 0.0)
        var_l = jnp.sum(d * d, axis=-1, keepdims=True) * inv_n
        yn = (y - mu_l) * jax.lax.rsqrt(var_l + LOGITS_EPS) * gl_ref[...] + betal_ref[...]
        o_ref[...] = jnp.where(mask, jax.nn.gelu(yn, approximate=False), 0.0)


def ff2_ln_logits(x, w2, b2, residual, g2, beta2, wl, bl, gl, betal, num_labels):
    M, K = x.shape
    N = w2.shape[1]                # hidden
    tm, tk = _tile(M, TM, 8), _tile(K, TK, 128)
    return pl.pallas_call(
        functools.partial(_ff2_ln_logits_kernel, num_labels=num_labels),
        out_shape=jax.ShapeDtypeStruct((M, LPAD), jnp.float32),
        grid=(M // tm, K // tk),
        in_specs=[pl.BlockSpec((tm, tk), lambda i, k: (i, k)),
                  pl.BlockSpec((tk, N), lambda i, k: (k, 0)),
                  pl.BlockSpec((1, N), lambda i, k: (0, 0)),
                  pl.BlockSpec((tm, N), lambda i, k: (i, 0)),
                  pl.BlockSpec((1, N), lambda i, k: (0, 0)),
                  pl.BlockSpec((1, N), lambda i, k: (0, 0)),
                  pl.BlockSpec((N, LPAD), lambda i, k: (0, 0)),
                  pl.BlockSpec((1, LPAD), lambda i, k: (0, 0)),
                  pl.BlockSpec((1, LPAD), lambda i, k: (0, 0)),
                  pl.BlockSpec((1, LPAD), lambda i, k: (0, 0))],
        out_specs=pl.BlockSpec((tm, LPAD), lambda i, k: (i, 0)),
        scratch_shapes=[pltpu.VMEM((tm, N), jnp.float32)],
        compiler_params=_compiler_params(("parallel", "arbitrary")),
    )(x, w2, b2.reshape(1, N), residual, g2.reshape(1, N), beta2.reshape(1, N),
      wl, bl.reshape(1, LPAD), gl.reshape(1, LPAD), betal.reshape(1, LPAD))


# ----------------------------- parameters -----------------------------

def init_params(key, vocab, max_pos, hidden, heads, ffn, num_labels):
    ks = jax.random.split(key, 7)
    std = 0.02
    w_log = jax.random.normal(ks[6], (hidden, num_labels), jnp.float32) * std
    w_log_pad = jnp.zeros((hidden, LPAD), jnp.float32).at[:, :num_labels].set(w_log)
    p = dict(
        num_heads=heads,
        num_labels=num_labels,
        word_emb=jax.random.normal(ks[0], (vocab, hidden), jnp.float32) * std,
        pos_emb=jax.random.normal(ks[1], (max_pos, hidden), jnp.float32) * std,
        emb_ln_g=jnp.ones((hidden,), jnp.float32),
        emb_ln_b=jnp.zeros((hidden,), jnp.float32),
        # MXU weights stored bf16 (halves weight DMA); accumulation stays f32.
        w_qkv=(jax.random.normal(ks[2], (3, hidden, hidden), jnp.float32) * std
               ).astype(jnp.bfloat16),
        b_qkv=jnp.zeros((3, 1, hidden), jnp.float32),
        w_o=(jax.random.normal(ks[3], (hidden, hidden), jnp.float32) * std
             ).astype(jnp.bfloat16),
        b_o=jnp.zeros((hidden,), jnp.float32),
        ln1_g=jnp.ones((hidden,), jnp.float32),
        ln1_b=jnp.zeros((hidden,), jnp.float32),
        w_ff1=(jax.random.normal(ks[4], (hidden, ffn), jnp.float32) * std
               ).astype(jnp.bfloat16),
        b_ff1=jnp.zeros((ffn,), jnp.float32),
        w_ff2=(jax.random.normal(ks[5], (ffn, hidden), jnp.float32) * std
               ).astype(jnp.bfloat16),
        b_ff2=jnp.zeros((hidden,), jnp.float32),
        ln2_g=jnp.ones((hidden,), jnp.float32),
        ln2_b=jnp.zeros((hidden,), jnp.float32),
        w_log=w_log_pad.astype(jnp.bfloat16),
        b_log=jnp.zeros((LPAD,), jnp.float32),
        log_ln_g=jnp.ones((LPAD,), jnp.float32),
        log_ln_b=jnp.zeros((LPAD,), jnp.float32),
    )
    return p


# ----------------------------- forward pass -----------------------------

def ner_forward(params, input_ids, attention_mask):
    B, S = input_ids.shape
    H = params["word_emb"].shape[1]
    nh = params["num_heads"]
    dh = H // nh
    L = params["num_labels"]

    # --- embeddings (gather stays in XLA glue; LayerNorm in-kernel, bf16 out) ---
    emb = params["word_emb"][input_ids] + params["pos_emb"][:S][None, :, :]
    x = layernorm(emb.reshape(B * S, H), params["emb_ln_g"], params["emb_ln_b"])

    # --- multi-head self-attention (QKV emitted as [3, B*S, H]; no split copies) ---
    qkv = qkv_linear(x, params["w_qkv"], params["b_qkv"])
    bias = ((1.0 - attention_mask.astype(jnp.float32)) * -1e9).reshape(B, 1, S)
    ctx = attention(qkv, bias, B, S, nh, dh)                        # [B*S, H] bf16

    # output projection + residual + LN1 (fused)
    x = linear_add_ln(ctx, params["w_o"], params["b_o"], x,
                      params["ln1_g"], params["ln1_b"])

    # --- feed-forward ---
    h = linear(x, params["w_ff1"], params["b_ff1"], gelu=True)

    # FF2 + residual + LN2 + LogitsLayer (fused; last_hidden_state never hits HBM)
    logits = ff2_ln_logits(h, params["w_ff2"], params["b_ff2"], x,
                           params["ln2_g"], params["ln2_b"],
                           params["w_log"], params["b_log"],
                           params["log_ln_g"], params["log_ln_b"], L)
    return logits[:, :L].reshape(B, S, L)


# ----------------------------- main -----------------------------

if __name__ == "__main__":
    B, S = 2, 8
    HIDDEN, HEADS, FFN = 32, 2, 64
    VOCAB, MAX_POS, NUM_LABELS = 100, 16, 8

    key = jax.random.PRNGKey(0)
    k_param, k_ids = jax.random.split(key)

    params = init_params(k_param, VOCAB, MAX_POS, HIDDEN, HEADS, FFN, NUM_LABELS)

    input_ids = jax.random.randint(k_ids, (B, S), 0, VOCAB, dtype=jnp.int32)
    attention_mask = jnp.ones((B, S), dtype=jnp.int32)
    attention_mask = attention_mask.at[1, 6:].set(0)   # padded tail on batch 1

    out = ner_forward(params, input_ids, attention_mask)
    jax.block_until_ready(out)

    assert out.shape == (B, S, NUM_LABELS)
    assert jnp.all(jnp.isfinite(out))
    print("KERNEL_OK")
</pallas_src>

<mosaic_0001>
module attributes {stable_mosaic.version = 11 : i64} {
  func.func @_ln_kernel(%arg0: i32, %arg1: memref<16x32xf32, #tpu.memory_space<vmem>>, %arg2: memref<1x32xf32, #tpu.memory_space<vmem>>, %arg3: memref<1x32xf32, #tpu.memory_space<vmem>>, %arg4: memref<16x32xbf16, #tpu.memory_space<vmem>>) attributes {dimension_semantics = [#tpu.dimension_semantics<parallel>], iteration_bounds = array<i64: 1>, scalar_prefetch = 0 : i64, scratch_operands = 0 : i64, tpu.core_type = #tpu.core_type<tc>, window_params = [{transform_indices = @transform_0, window_bounds = array<i64: 16, 32>}, {pipeline_mode = #tpu.pipeline_mode<synchronous>, transform_indices = @transform_1, window_bounds = array<i64: 1, 32>}, {pipeline_mode = #tpu.pipeline_mode<synchronous>, transform_indices = @transform_2, window_bounds = array<i64: 1, 32>}, {transform_indices = @transform_3, window_bounds = array<i64: 16, 32>}]} {
    %c0 = arith.constant 0 : index
    %c0_0 = arith.constant 0 : index
    %0 = vector.load %arg1[%c0, %c0_0] : memref<16x32xf32, #tpu.memory_space<vmem>>, vector<16x32xf32>
    %cst = arith.constant dense<0.000000e+00> : vector<16xf32>
    %1 = vector.multi_reduction <add>, %0, %cst [1] : vector<16x32xf32> to vector<16xf32>
    %2 = vector.shape_cast %1 : vector<16xf32> to vector<16x1xf32>
    %cst_1 = arith.constant 3.200000e+01 : f32
    %3 = vector.broadcast %cst_1 : f32 to vector<16x1xf32>
    %4 = arith.divf %2, %3 : vector<16x1xf32>
    %5 = vector.broadcast %4 : vector<16x1xf32> to vector<16x32xf32>
    %6 = arith.subf %0, %5 : vector<16x32xf32>
    %7 = arith.mulf %6, %6 : vector<16x32xf32>
    %cst_2 = arith.constant dense<0.000000e+00> : vector<16xf32>
    %8 = vector.multi_reduction <add>, %7, %cst_2 [1] : vector<16x32xf32> to vector<16xf32>
    %9 = vector.shape_cast %8 : vector<16xf32> to vector<16x1xf32>
    %cst_3 = arith.constant 3.200000e+01 : f32
    %10 = vector.broadcast %cst_3 : f32 to vector<16x1xf32>
    %11 = arith.divf %9, %10 : vector<16x1xf32>
    %12 = vector.broadcast %4 : vector<16x1xf32> to vector<16x32xf32>
    %13 = arith.subf %0, %12 : vector<16x32xf32>
    %cst_4 = arith.constant 9.99999996E-13 : f32
    %14 = vector.broadcast %cst_4 : f32 to vector<16x1xf32>
    %15 = arith.addf %11, %14 : vector<16x1xf32>
    %16 = math.rsqrt %15 : vector<16x1xf32>
    %17 = vector.broadcast %16 : vector<16x1xf32> to vector<16x32xf32>
    %18 = arith.mulf %13, %17 : vector<16x32xf32>
    %c0_5 = arith.constant 0 : index
    %c0_6 = arith.constant 0 : index
    %19 = vector.load %arg2[%c0_5, %c0_6] : memref<1x32xf32, #tpu.memory_space<vmem>>, vector<1x32xf32>
    %20 = vector.broadcast %19 : vector<1x32xf32> to vector<16x32xf32>
    %21 = arith.mulf %18, %20 : vector<16x32xf32>
    %c0_7 = arith.constant 0 : index
    %c0_8 = arith.constant 0 : index
    %22 = vector.load %arg3[%c0_7, %c0_8] : memref<1x32xf32, #tpu.memory_space<vmem>>, vector<1x32xf32>
    %23 = vector.broadcast %22 : vector<1x32xf32> to vector<16x32xf32>
    %24 = arith.addf %21, %23 : vector<16x32xf32>
    %25 = arith.truncf %24 : vector<16x32xf32> to vector<16x32xbf16>
    %c0_9 = arith.constant 0 : index
    %c0_10 = arith.constant 0 : index
    %26 = vector.load %arg4[%c0_9, %c0_10] : memref<16x32xbf16, #tpu.memory_space<vmem>>, vector<16x32xbf16>
    tpu.vector_store %arg4[%c0_9, %c0_10], %25 {strides = array<i32>} : memref<16x32xbf16, #tpu.memory_space<vmem>>, vector<16x32xbf16>,
    return
  }
  func.func @transform_0(%arg0: i32) -> (i32, i32) {
    %c0_i32 = arith.constant 0 : i32
    %c0_i32_0 = arith.constant 0 : i32
    return %arg0, %c0_i32 : i32, i32
  }
  func.func @transform_1(%arg0: i32) -> (i32, i32) {
    %c0_i32 = arith.constant 0 : i32
    %c0_i32_0 = arith.constant 0 : i32
    %c0_i32_1 = arith.constant 0 : i32
    return %c0_i32, %c0_i32_0 : i32, i32
  }
  func.func @transform_2(%arg0: i32) -> (i32, i32) {
    %c0_i32 = arith.constant 0 : i32
    %c0_i32_0 = arith.constant 0 : i32
    %c0_i32_1 = arith.constant 0 : i32
    return %c0_i32, %c0_i32_0 : i32, i32
  }
  func.func @transform_3(%arg0: i32) -> (i32, i32) {
    %c0_i32 = arith.constant 0 : i32
    %c0_i32_0 = arith.constant 0 : i32
    return %arg0, %c0_i32 : i32, i32
  }
}

</mosaic_0001>

<bundles_post_ra>
// kernel: tpu_custom_call.1
= control target key start
LH: loop header
LB: loop body
LE: loop exit
PB: predicated region body
PF: predicated region fallthrough
CT: control target
= control target key end

     0   :  { %8 = vsyncpa [#allocation3], 0  ;;  %s229_s0 = inlined_call_operand.hbm [shape: f32[16,32], index: 0, kind: input, shape index: {}]   ;;  %s230_s1 = inlined_call_operand.vmem [shape: f32[1,32], index: 1, kind: input, shape index: {}]   ;;  %s231_s2 = inlined_call_operand.vmem [shape: f32[1,32], index: 2, kind: input, shape index: {}]   ;;  %s232_s3 = inlined_call_operand.hbm [shape: bf16[16,32], index: 3, kind: output, shape index: {}]  }
   0x1   :  { %9 = vsyncpa [#allocation4], 0  ;;  %s169_s12 = smov [#allocation2]   ;;  %s121_s16 = scalar_lea.hbm %s229_s0, 256 }
   0x2   :  { %s15_s13 = sshll.u32 %s169_s12, 4  ;;  %p122_p0 = scmp.ne.s32.totalorder %s229_s0, %s121_s16  ;;  %s16_s13 = int_to_ptr.vmem [resolvable:$true] %s15_s13 }
   0x3   :  { %p125_p1 = scmp.lt.u32.totalorder %s121_s16, %s229_s0 }
   0x5   :  { %p127_p2 = pnand %p125_p1, %p122_p0 }
   0x7   :  { %130 = shalt.err (!%p127_p2)
}
   0x8   :  { %s131_s21 = scalar_lea.vmem %s16_s13, 256  ;;  %p136_p4 = scmp.lt.s32.totalorder %s16_s13, %s16_s13 }
   0x9   :  { %p132_p3 = scmp.ne.s32.totalorder %s16_s13, %s131_s21  ;;  %p137_p5 = scmp.lt.s32.totalorder %s131_s21, %s131_s21 }
   0xb   :  { %p138_p6 = por %p137_p5, %p136_p4 }
   0xd   :  { %p139_p7 = pnand %p138_p6, %p132_p3 }
   0xf   :  { %142 = shalt.err (!%p139_p7)
}
  0x10   :  { %s170_s22 = smov 128   ;;  %s171_s23 = smov 8  }
  0x11   :  { %21 = dma.hbm_to_vmem [thread:$0]  %s229_s0, 256, %s16_s13, [#allocation3], %s170_s22, %s170_s22, %s171_s23  }
  0x12   :  { %165 = dma.done.wait [#allocation3], 256  }
  0x13   :  { %166 = vsyncadd [#allocation3], 4294967040  ;;  %vm31_vm0 = vcmask 261120   ;;  %v29_v0 = vld [vmem:[#allocation2] sm:$0xff]  ;;  %v30_v1 = vld [vmem:[#allocation2 + $0x8] sm:$0xff]  ;;  %vm85_vm1 = vcmask 257024  }
  0x14   :  { %v32_v2 = vsel %vm31_vm0, %v29_v0, 0.0  ;;  %v35_v3 = vsel %vm31_vm0, %v30_v1, 0.0  ;;  %v105_v21 = vld [vmem:[%s230_s1] ss:$0 sm:$0xff]  ;;  %s172_s29 = smov [#allocation5]  }
  0x15   :  { %33 = vadd.xlane.f32.xlu0 %v32_v2  ;;  %v106_v23 = vld [vmem:[%s231_s2] ss:$0 sm:$0xff]  ;;  %s93_s30 = sshll.u32 %s172_s29, 4  ;;  %s94_s30 = int_to_ptr.vmem [resolvable:$true] %s93_s30 }
  0x16   :  { %s143_s1 = scalar_lea.vmem %s94_s30, 128  ;;  %p148_p9 = scmp.lt.s32.totalorder %s94_s30, %s94_s30 }
  0x17   :  { %p144_p8 = scmp.ne.s32.totalorder %s94_s30, %s143_s1  ;;  %p149_p10 = scmp.lt.s32.totalorder %s143_s1, %s143_s1 }
  0x19   :  { %36 = vadd.xlane.f32.xlu0 %v35_v3  ;;  %p150_p11 = por %p149_p10, %p148_p9 }
  0x1b   :  { %p151_p12 = pnand %p150_p11, %p144_p8 }
  0xa2   :  { %v34_v4 = vpop.xlane.xlu0 %33 }
  0xa3   :  { %v39_v5 = vmul.f32 0.03125, %v34_v4 }
  0xa5   :  { %v41_v6 = vsub.f32 %v29_v0, %v39_v5 }
  0xa6   :  { %v37_v7 = vpop.xlane.xlu0 %36 }
  0xa7   :  { %v40_v8 = vmul.f32 0.03125, %v37_v7  ;;  %v43_v9 = vmul.f32 %v41_v6, %v41_v6 }
  0xa9   :  { %v42_v10 = vsub.f32 %v30_v1, %v40_v8  ;;  %v45_v11 = vsel %vm31_vm0, %v43_v9, 0.0 }
  0xaa   :  { %46 = vadd.xlane.f32.xlu1 %v45_v11 }
  0xab   :  { %v44_v12 = vmul.f32 %v42_v10, %v42_v10 }
  0xad   :  { %v48_v13 = vsel %vm31_vm0, %v44_v12, 0.0 }
  0xae   :  { %49 = vadd.xlane.f32.xlu1 %v48_v13 }
 0x137   :  { %v47_v14 = vpop.xlane.xlu1 %46 }
 0x138   :  { %v51_v15 = vmul.f32 0.03125, %v47_v14 }
 0x13a   :  { %v53_v16 = vadd.f32 1e-12, %v51_v15 }
 0x13b   :  { %v50_v17 = vpop.xlane.xlu1 %49 }
 0x13c   :  { %117 = vrsqrt.f32 %v53_v16  ;;  %v52_v18 = vmul.f32 0.03125, %v50_v17 }
 0x13e   :  { %v54_v19 = vadd.f32 1e-12, %v52_v18 }
 0x140   :  { %119 = vrsqrt.f32 %v54_v19 }
 0x146   :  { %v118_v20 = vpop.eup %117 }
 0x147   :  { %v57_v22 = vmul.f32 %v118_v20, %v41_v6 }
 0x149   :  { %v66_v24 = vmul.f32 %v105_v21, %v57_v22 }
 0x14a   :  { %v120_v25 = vpop.eup %119 }
 0x14b   :  { %v58_v26 = vmul.f32 %v120_v25, %v42_v10  ;;  %v75_v27 = vadd.f32 %v106_v23, %v66_v24 }
 0x14d   :  { %v67_v28 = vmul.f32 %v105_v21, %v58_v26  ;;  %v109_v29 = vpack.c.bf16 %v75_v27, %v75_v27 }
 0x14f   :  { %v76_v30 = vadd.f32 %v106_v23, %v67_v28  ;;  %86 = vst.msk [vmem:[#allocation5] sm:$0xf] %vm85_vm1, %v109_v29 }
 0x151   :  { %v110_v31 = vpack.c.bf16 %v76_v30, %v76_v30 }
 0x153   :  { %87 = vst.msk [vmem:[#allocation5 + $0x4] sm:$0xf] %vm85_vm1, %v110_v31 }
 0x154   :  { %154 = shalt.err (!%p151_p12)
}
 0x155   :  { %s155_s5 = scalar_lea.hbm %s232_s3, 128 }
 0x156   :  { %p156_p13 = scmp.ne.s32.totalorder %s232_s3, %s155_s5  ;;  %p159_p0 = scmp.lt.u32.totalorder %s155_s5, %s232_s3 }
 0x158   :  { %p161_p1 = pnand %p159_p0, %p156_p13 }
 0x15a   :  { %164 = shalt.err (!%p161_p1)
}
 0x15b   :  { %s173_s10 = smov 64   ;;  %s174_s11 = smov 4  }
 0x15c   :  { %99 = dma.vmem_to_hbm [thread:$0]  %s94_s30, 128, %s232_s3, [#allocation4], %s173_s10, %s173_s10, %s174_s11  }
 0x15d   :  { %167 = dma.done.wait [#allocation4], 128  }
 0x15e   :  { %168 = vsyncadd [#allocation4], 4294967168 }
 0x15f   :  { %103 = vsyncpa [#allocation3], 1 }
 0x160   :  { %104 = vsyncpa [#allocation4], 1 }

</bundles_post_ra>
